<compile_context>
chip_gen: v6e
topology: v6e:2x2x1
jax: 0.10.0
libtpu: 0.0.40
codegen_flags: <defaults>
</compile_context>

<pallas_src>
import jax
import jax.numpy as jnp
from jax.experimental import pallas as pl
from jax.experimental.pallas import tpu as pltpu

NUM_HIDDEN = 128
IN_DIM = 8
SUBLANE = 8
DEFAULT_TILE_B = 512  # review: 512-2048 for realistic RL rollout batches


def actor_critic_forward_kernel(x_ref, w1_ref, b1_ref, w2_ref, b2_ref, o_ref):
    # x_ref : (TILE_B, 8)    f32
    # w1_ref: (8, 128)       bf16   b1_ref: (1, 128) f32
    # w2_ref: (128, 128)     bf16   b2_ref: (1, 128) f32
    # o_ref : (TILE_B, 128)  f32
    x = x_ref[...].astype(w1_ref.dtype)  # bf16 MXU operand

    # fc1 + ReLU  (bf16 MXU, f32 accumulate; bias/ReLU in f32)
    h1 = jnp.dot(x, w1_ref[...], preferred_element_type=jnp.float32) + b1_ref[...]
    h1 = jnp.maximum(h1, 0.0)

    # fc2 + ReLU
    h2 = jnp.dot(h1.astype(w2_ref.dtype), w2_ref[...],
                 preferred_element_type=jnp.float32) + b2_ref[...]
    h2 = jnp.maximum(h2, 0.0)

    o_ref[...] = h2.astype(o_ref.dtype)


def actor_critic_forward(x, w1, b1, w2, b2, *, tile_b=DEFAULT_TILE_B):
    """x: (B, 8) f32; w1/w2: bf16 (in, out); b1/b2: f32 (1, 128).

    Returns (B, NUM_HIDDEN) f32.
    """
    B = x.shape[0]

    # Tile the batch; shrink the tile for small B, always a multiple of 8.
    tile_b = min(tile_b, pl.cdiv(B, SUBLANE) * SUBLANE)
    tile_b = max(tile_b, SUBLANE)
    b_pad = pl.cdiv(B, tile_b) * tile_b
    if b_pad != B:
        x = jnp.pad(x, ((0, b_pad - B), (0, 0)))

    out = pl.pallas_call(
        actor_critic_forward_kernel,
        out_shape=jax.ShapeDtypeStruct((b_pad, NUM_HIDDEN), jnp.float32),
        grid=(b_pad // tile_b,),
        in_specs=[
            # activations stream per batch tile
            pl.BlockSpec((tile_b, IN_DIM), lambda i: (i, 0)),
            # weights/biases: same block index every step -> VMEM-resident
            pl.BlockSpec((IN_DIM, NUM_HIDDEN), lambda i: (0, 0)),
            pl.BlockSpec((1, NUM_HIDDEN), lambda i: (0, 0)),
            pl.BlockSpec((NUM_HIDDEN, NUM_HIDDEN), lambda i: (0, 0)),
            pl.BlockSpec((1, NUM_HIDDEN), lambda i: (0, 0)),
        ],
        out_specs=pl.BlockSpec((tile_b, NUM_HIDDEN), lambda i: (i, 0)),
        compiler_params=pltpu.CompilerParams(
            dimension_semantics=("parallel",),  # shard batch tiles across TCs (v7x)
            vmem_limit_bytes=32 << 20,          # modest; fits v7x 64 MiB pool easily
        ),
    )(x, w1, b1, w2, b2)

    return out[:B] if b_pad != B else out


def init_params(key):
    """Deterministic synthetic parameters, PyTorch nn.Linear-style uniform init.

    PyTorch stores Linear weight as (out, in); we store the transpose (in, out)
    so the kernel computes x @ W.  Weights are cast to bf16 (MXU operands);
    biases stay f32.
    """
    k1, k2, k3, k4 = jax.random.split(key, 4)
    bound1 = 1.0 / jnp.sqrt(IN_DIM)
    bound2 = 1.0 / jnp.sqrt(NUM_HIDDEN)
    w1 = jax.random.uniform(k1, (IN_DIM, NUM_HIDDEN), jnp.float32, -bound1, bound1)
    b1 = jax.random.uniform(k2, (1, NUM_HIDDEN), jnp.float32, -bound1, bound1)
    w2 = jax.random.uniform(k3, (NUM_HIDDEN, NUM_HIDDEN), jnp.float32, -bound2, bound2)
    b2 = jax.random.uniform(k4, (1, NUM_HIDDEN), jnp.float32, -bound2, bound2)
    return w1.astype(jnp.bfloat16), b1, w2.astype(jnp.bfloat16), b2


def reference_forward(x, w1, b1, w2, b2):
    # Mirrors kernel math: bf16 MXU operands, f32 accumulation / bias / ReLU.
    h1 = jnp.dot(x.astype(w1.dtype), w1, preferred_element_type=jnp.float32) + b1
    h1 = jnp.maximum(h1, 0.0)
    h2 = jnp.dot(h1.astype(w2.dtype), w2, preferred_element_type=jnp.float32) + b2
    return jnp.maximum(h2, 0.0)


if __name__ == "__main__":
    key = jax.random.PRNGKey(0)
    k_params, k_x = jax.random.split(key)

    w1, b1, w2, b2 = init_params(k_params)

    # Small demo batch (not a multiple of 8 on purpose, to exercise the padding
    # path).  Real RL usage should batch thousands of rows per call so the
    # weight DMA + launch overhead is amortized.
    B = 12
    x = jax.random.normal(k_x, (B, IN_DIM), jnp.float32)

    out = actor_critic_forward(x, w1, b1, w2, b2)
    out = jax.block_until_ready(out)

    ref = reference_forward(x, w1, b1, w2, b2)
    assert out.shape == (B, NUM_HIDDEN)
    assert jnp.allclose(out, ref, atol=1e-4, rtol=1e-4)

    # TODO(synk): get_action_and_value / evaluate_actions (actor_mean/critic
    # heads, tanh squash, Normal sampling, log_prob, entropy) are outside
    # forward(); fusing the two head matmuls here would add lane-sparse (2- and
    # 1-wide) outputs, so they are left to the surrounding XLA graph.
    print("KERNEL_OK")
</pallas_src>

<mosaic_0001>
module attributes {stable_mosaic.version = 11 : i64} {
  func.func @actor_critic_forward_kernel(%arg0: i32, %arg1: memref<16x8xf32, #tpu.memory_space<vmem>>, %arg2: memref<8x128xbf16, #tpu.memory_space<vmem>>, %arg3: memref<1x128xf32, #tpu.memory_space<vmem>>, %arg4: memref<128x128xbf16, #tpu.memory_space<vmem>>, %arg5: memref<1x128xf32, #tpu.memory_space<vmem>>, %arg6: memref<16x128xf32, #tpu.memory_space<vmem>>) attributes {dimension_semantics = [#tpu.dimension_semantics<parallel>], iteration_bounds = array<i64: 1>, scalar_prefetch = 0 : i64, scratch_operands = 0 : i64, tpu.core_type = #tpu.core_type<tc>, window_params = [{transform_indices = @transform_0, window_bounds = array<i64: 16, 8>}, {pipeline_mode = #tpu.pipeline_mode<synchronous>, transform_indices = @transform_1, window_bounds = array<i64: 8, 128>}, {pipeline_mode = #tpu.pipeline_mode<synchronous>, transform_indices = @transform_2, window_bounds = array<i64: 1, 128>}, {pipeline_mode = #tpu.pipeline_mode<synchronous>, transform_indices = @transform_3, window_bounds = array<i64: 128, 128>}, {pipeline_mode = #tpu.pipeline_mode<synchronous>, transform_indices = @transform_4, window_bounds = array<i64: 1, 128>}, {transform_indices = @transform_5, window_bounds = array<i64: 16, 128>}]} {
    %c0 = arith.constant 0 : index
    %c0_0 = arith.constant 0 : index
    %0 = vector.load %arg1[%c0, %c0_0] : memref<16x8xf32, #tpu.memory_space<vmem>>, vector<16x8xf32>
    %1 = arith.truncf %0 : vector<16x8xf32> to vector<16x8xbf16>
    %c0_1 = arith.constant 0 : index
    %c0_2 = arith.constant 0 : index
    %2 = vector.load %arg2[%c0_1, %c0_2] : memref<8x128xbf16, #tpu.memory_space<vmem>>, vector<8x128xbf16>
    %cst = arith.constant dense<0.000000e+00> : vector<16x128xf32>
    %3 = tpu.matmul %1, %2, %cst {dimension_numbers = #tpu.dot_dimension_numbers<[1], [0], [0], [1], [0, 0, 1, 1], [], []>} : vector<16x8xbf16>, vector<8x128xbf16>, vector<16x128xf32> -> vector<16x128xf32>
    %c0_3 = arith.constant 0 : index
    %c0_4 = arith.constant 0 : index
    %4 = vector.load %arg3[%c0_3, %c0_4] : memref<1x128xf32, #tpu.memory_space<vmem>>, vector<1x128xf32>
    %5 = vector.broadcast %4 : vector<1x128xf32> to vector<16x128xf32>
    %6 = arith.addf %3, %5 : vector<16x128xf32>
    %cst_5 = arith.constant 0.000000e+00 : f32
    %7 = vector.broadcast %cst_5 : f32 to vector<16x128xf32>
    %8 = arith.maximumf %6, %7 : vector<16x128xf32>
    %9 = arith.truncf %8 : vector<16x128xf32> to vector<16x128xbf16>
    %c0_6 = arith.constant 0 : index
    %c0_7 = arith.constant 0 : index
    %10 = vector.load %arg4[%c0_6, %c0_7] : memref<128x128xbf16, #tpu.memory_space<vmem>>, vector<128x128xbf16>
    %cst_8 = arith.constant dense<0.000000e+00> : vector<16x128xf32>
    %11 = tpu.matmul %9, %10, %cst_8 {dimension_numbers = #tpu.dot_dimension_numbers<[1], [0], [0], [1], [0, 0, 1, 1], [], []>} : vector<16x128xbf16>, vector<128x128xbf16>, vector<16x128xf32> -> vector<16x128xf32>
    %c0_9 = arith.constant 0 : index
    %c0_10 = arith.constant 0 : index
    %12 = vector.load %arg5[%c0_9, %c0_10] : memref<1x128xf32, #tpu.memory_space<vmem>>, vector<1x128xf32>
    %13 = vector.broadcast %12 : vector<1x128xf32> to vector<16x128xf32>
    %14 = arith.addf %11, %13 : vector<16x128xf32>
    %cst_11 = arith.constant 0.000000e+00 : f32
    %15 = vector.broadcast %cst_11 : f32 to vector<16x128xf32>
    %16 = arith.maximumf %14, %15 : vector<16x128xf32>
    %c0_12 = arith.constant 0 : index
    %c0_13 = arith.constant 0 : index
    %17 = vector.load %arg6[%c0_12, %c0_13] : memref<16x128xf32, #tpu.memory_space<vmem>>, vector<16x128xf32>
    tpu.vector_store %arg6[%c0_12, %c0_13], %16 {strides = array<i32>} : memref<16x128xf32, #tpu.memory_space<vmem>>, vector<16x128xf32>,
    return
  }
  func.func @transform_0(%arg0: i32) -> (i32, i32) {
    %c0_i32 = arith.constant 0 : i32
    %c0_i32_0 = arith.constant 0 : i32
    return %arg0, %c0_i32 : i32, i32
  }
  func.func @transform_1(%arg0: i32) -> (i32, i32) {
    %c0_i32 = arith.constant 0 : i32
    %c0_i32_0 = arith.constant 0 : i32
    %c0_i32_1 = arith.constant 0 : i32
    return %c0_i32, %c0_i32_0 : i32, i32
  }
  func.func @transform_2(%arg0: i32) -> (i32, i32) {
    %c0_i32 = arith.constant 0 : i32
    %c0_i32_0 = arith.constant 0 : i32
    %c0_i32_1 = arith.constant 0 : i32
    return %c0_i32, %c0_i32_0 : i32, i32
  }
  func.func @transform_3(%arg0: i32) -> (i32, i32) {
    %c0_i32 = arith.constant 0 : i32
    %c0_i32_0 = arith.constant 0 : i32
    %c0_i32_1 = arith.constant 0 : i32
    return %c0_i32, %c0_i32_0 : i32, i32
  }
  func.func @transform_4(%arg0: i32) -> (i32, i32) {
    %c0_i32 = arith.constant 0 : i32
    %c0_i32_0 = arith.constant 0 : i32
    %c0_i32_1 = arith.constant 0 : i32
    return %c0_i32, %c0_i32_0 : i32, i32
  }
  func.func @transform_5(%arg0: i32) -> (i32, i32) {
    %c0_i32 = arith.constant 0 : i32
    %c0_i32_0 = arith.constant 0 : i32
    return %arg0, %c0_i32 : i32, i32
  }
}

</mosaic_0001>

<bundles_post_ra>
// kernel: tpu_custom_call.1
= control target key start
LH: loop header
LB: loop body
LE: loop exit
PB: predicated region body
PF: predicated region fallthrough
CT: control target
= control target key end

     0   :  { %10 = vsyncpa [#allocation3], 0  ;;  %s399_s0 = inlined_call_operand.vmem [shape: f32[16,8], index: 0, kind: input, shape index: {}]   ;;  %s400_s1 = inlined_call_operand.vmem [shape: bf16[8,128], index: 1, kind: input, shape index: {}]   ;;  %s401_s2 = inlined_call_operand.vmem [shape: f32[1,128], index: 2, kind: input, shape index: {}]   ;;  %s402_s3 = inlined_call_operand.hbm [shape: bf16[128,128], index: 3, kind: input, shape index: {}]   ;;  %s403_s4 = inlined_call_operand.vmem [shape: f32[1,128], index: 4, kind: input, shape index: {}]   ;;  %s404_s5 = inlined_call_operand.hbm [shape: f32[16,128], index: 5, kind: output, shape index: {}]  }
   0x1   :  { %11 = vsyncpa [#allocation4], 0  ;;  %s340_s18 = smov [#allocation2]  }
   0x2   :  { %s23_s19 = sshll.u32 %s340_s18, 4  ;;  %s24_s19 = int_to_ptr.vmem [resolvable:$true] %s23_s19 }
   0x3   :  { %s304_s20 = scalar_lea.vmem %s24_s19, 1024  ;;  %p309_p1 = scmp.lt.s32.totalorder %s24_s19, %s24_s19 }
   0x4   :  { %p305_p0 = scmp.ne.s32.totalorder %s24_s19, %s304_s20  ;;  %p310_p2 = scmp.lt.s32.totalorder %s304_s20, %s304_s20 }
   0x6   :  { %p311_p3 = por %p310_p2, %p309_p1 }
   0x8   :  { %p312_p4 = pnand %p311_p3, %p305_p0 }
   0xa   :  { %315 = shalt.err (!%p312_p4)
}
   0xb   :  { %s341_s21 = smov 64   ;;  %s342_s22 = smov 4  }
   0xc   :  { %29 = dma.hbm_to_vmem [thread:$0]  %s402_s3, 1024, %s24_s19, [#allocation3], %s341_s21, %s341_s21, %s342_s22  }
   0xd   :  { %336 = dma.done.wait [#allocation3], 1024  }
   0xe   :  { %337 = vsyncadd [#allocation3], 4294966272  ;;  %v343_v0 = vmov 0.0   ;;  %vm344_vm0 = vmmov 0   ;;  %vm51_vm1 = vcmask 1043456   ;;  %v36_v2 = vld [vmem:[%s399_s0] sm:$0xff] }
   0xf   :  { %254 = vmatprep.subr.bf16.mxu0 %v343_v0  ;;  %256 = vmatprep.mubr.msk.bf16.mxu0 %vm344_vm0, %v343_v0  ;;  %v39_v1 = vld [vmem:[%s400_s1] sm:$0xf]  ;;  %v37_v3 = vld [vmem:[%s399_s0 + $0x8] sm:$0xff]  ;;  %v288_v6 = vld [vmem:[#allocation2 + $0x38] sm:$0xff]   ;;  %vm47_vm2 = vcmask 64512   ;;  %s345_s7 = smov [#allocation5]  }
  0x10   :  { %260 = vmatprep.subr.bf16.mxu1 %v343_v0  ;;  %276 = vmatprep.mubr.msk.bf16.mxu1 %vm344_vm0, %v343_v0  ;;  %v53_v4 = vsel %vm51_vm1, %v39_v1, 0  ;;  %v38_v5 = vpack.c.bf16 %v37_v3, %v36_v2  ;;  %v289_v7 = vld [vmem:[#allocation2 + $0x30] sm:$0xff]   ;;  %v290_v8 = vld [vmem:[#allocation2 + $0x28] sm:$0xff]   ;;  %v291_v9 = vld [vmem:[#allocation2 + $0x20] sm:$0xff]  }
  0x11   :  { %255 = vmatpush3.bf16.msra.mxu0 %v53_v4  ;;  %261 = vmatpush3.bf16.msra.mxu1 %v288_v6  ;;  %v292_v10 = vld [vmem:[#allocation2 + $0x18] sm:$0xff]   ;;  %v293_v11 = vld [vmem:[#allocation2 + $0x10] sm:$0xff]   ;;  %v294_v12 = vld [vmem:[#allocation2 + $0x8] sm:$0xff]  }
  0x12   :  { %262 = vmatprep.subr.bf16.mxu1 %v343_v0  ;;  %v295_v13 = vld [vmem:[#allocation2] sm:$0xff]  }
  0x13   :  { %v232_v14 = vld [vmem:[%s401_s2] ss:$0 sm:$0xff]  ;;  %s220_s2 = sshll.u32 %s345_s7, 4  ;;  %s221_s2 = int_to_ptr.vmem [resolvable:$true] %s220_s2 }
  0x14   :  { %257 = vmatmul.mubr.msk.bf16.vlgmr.msra.gmra.mxu0 %vm47_vm2, %v38_v5  ;;  %v234_v24 = vld [vmem:[%s403_s4] ss:$0 sm:$0xff]  ;;  %s316_s8 = scalar_lea.vmem %s221_s2, 256  ;;  %p321_p6 = scmp.lt.s32.totalorder %s221_s2, %s221_s2 }
  0x15   :  { %263 = vmatpush3.bf16.msra.mxu1 %v289_v7  ;;  %p317_p5 = scmp.ne.s32.totalorder %s221_s2, %s316_s8  ;;  %p322_p7 = scmp.lt.s32.totalorder %s316_s8, %s316_s8 }
  0x16   :  { %264 = vmatprep.subr.bf16.mxu1 %v343_v0 }
  0x17   :  { %p323_p8 = por %p322_p7, %p321_p6 }
  0x19   :  { %265 = vmatpush3.bf16.msra.mxu1 %v290_v8  ;;  %p324_p9 = pnand %p323_p8, %p317_p5 }
  0x1a   :  { %266 = vmatprep.subr.bf16.mxu1 %v343_v0 }
  0x1d   :  { %267 = vmatpush3.bf16.msra.mxu1 %v291_v9 }
  0x1e   :  { %268 = vmatprep.subr.bf16.mxu1 %v343_v0 }
  0x21   :  { %269 = vmatpush3.bf16.msra.mxu1 %v292_v10 }
  0x22   :  { %270 = vmatprep.subr.bf16.mxu1 %v343_v0 }
  0x25   :  { %271 = vmatpush3.bf16.msra.mxu1 %v293_v11 }
  0x26   :  { %272 = vmatprep.subr.bf16.mxu1 %v343_v0 }
  0x29   :  { %273 = vmatpush3.bf16.msra.mxu1 %v294_v12 }
  0x2a   :  { %274 = vmatprep.subr.bf16.mxu1 %v343_v0 }
  0x2d   :  { %275 = vmatpush3.bf16.msra.mxu1 %v295_v13 }
  0xd4   :  { %v89_v15 = vpop.f32.mrf.mxu0 }
  0xd5   :  { %v90_v17 = vadd.f32 %v232_v14, %v89_v15 }
  0xd6   :  { %v258_v16 = vpop.f32.mrf.mxu0 }
  0xd7   :  { %v96_v21 = vmax.f32 %v90_v17, 0.0 }
  0xd8   :  { %v92_v18 = vpop.f32.mrf.mxu0 }
  0xd9   :  { %v93_v19 = vadd.f32 %v232_v14, %v92_v18 }
  0xda   :  { %v259_v20 = vpop.f32.mrf.mxu0 }
  0xdb   :  { %v97_v22 = vmax.f32 %v93_v19, 0.0 }
  0xdd   :  { %v98_v23 = vpack.c.bf16 %v97_v22, %v96_v21 }
  0xdf   :  { %277 = vmatmul.mubr.bf16.vlgmr.msra.gmra.mxu1 %v98_v23 }
 0x19f   :  { %v204_v25 = vpop.f32.mrf.mxu1 }
 0x1a0   :  { %v205_v26 = vadd.f32 %v234_v24, %v204_v25 }
 0x1a1   :  { %v278_v27 = vpop.f32.mrf.mxu1 }
 0x1a2   :  { %v211_v28 = vmax.f32 %v205_v26, 0.0 }
 0x1a3   :  { %v207_v29 = vpop.f32.mrf.mxu1 }
 0x1a4   :  { %213 = vst [vmem:[#allocation5] sm:$0xff] %v211_v28  ;;  %v208_v30 = vadd.f32 %v234_v24, %v207_v29 }
 0x1a5   :  { %v279_v31 = vpop.f32.mrf.mxu1 }
 0x1a6   :  { %v212_v32 = vmax.f32 %v208_v30, 0.0 }
 0x1a8   :  { %214 = vst [vmem:[#allocation5 + $0x8] sm:$0xff] %v212_v32 }
 0x1a9   :  { %327 = shalt.err (!%p324_p9)
}
 0x1aa   :  { %s346_s4 = smov 128   ;;  %s347_s9 = smov 8  }
 0x1ab   :  { %226 = dma.vmem_to_hbm [thread:$0]  %s221_s2, 256, %s404_s5, [#allocation4], %s346_s4, %s346_s4, %s347_s9  }
 0x1ac   :  { %338 = dma.done.wait [#allocation4], 256  }
 0x1ad   :  { %339 = vsyncadd [#allocation4], 4294967040 }
 0x1ae   :  { %230 = vsyncpa [#allocation3], 1 }
 0x1af   :  { %231 = vsyncpa [#allocation4], 1 }

</bundles_post_ra>
